<compile_context>
chip_gen: v5e
topology: v5e:2x2
jax: 0.10.0
libtpu: 0.0.40
codegen_flags: <defaults>
</compile_context>

<pallas_src>
import math

import jax
import jax.numpy as jnp
import numpy as np
from jax import lax
from jax.experimental import pallas as pl
from jax.experimental.pallas import tpu as pltpu


# ----------------------------- Pallas kernels ------------------------------

def add_pe_kernel(emb_ref, pe_ref, o_ref):
    # elementwise: token embedding + positional encoding.
    # PE block is (tt, D) selected by the index_map -> broadcast over batch.
    o_ref[0] = emb_ref[0] + pe_ref[...]


def fused_embed_linear_kernel(emb_ref, pe_ref, w_ref, o_ref, h_ref):
    # grid = (B, T_tiles, V_tiles); V is the innermost ("arbitrary") axis.
    # h = emb + pe is computed once per (b, t) row tile into VMEM scratch and
    # reused for every vocab tile j (hoists the VPU add out of the V loop).
    j = pl.program_id(2)

    @pl.when(j == 0)
    def _():
        h_ref[...] = emb_ref[0] + pe_ref[...]        # f32 add, once per row tile

    w = w_ref[...]                                   # (tv, D), bf16 (or f32)
    h = h_ref[...].astype(w.dtype)                   # MXU operand dtype
    # weight kept in native (V, D) layout: contract D with D (no host-side .T)
    o_ref[0] = lax.dot_general(
        h, w,
        dimension_numbers=(((1,), (1,)), ((), ())),
        preferred_element_type=jnp.float32,
    )


# ------------------------------ helpers -------------------------------------

def _round_up(x, m):
    return (x + m - 1) // m * m


def _pick_tile(dim, candidates):
    """Largest candidate that evenly divides `dim`, else the full dim."""
    for c in candidates:
        if c <= dim and dim % c == 0:
            return c
    return dim


def sinusoidal_pe(T, D):
    pos = np.arange(T, dtype=np.float32)[:, None]
    i = np.arange(D, dtype=np.float32)[None, :]
    angle = pos / np.power(10000.0, (2.0 * np.floor(i / 2.0)) / D)
    pe = np.zeros((T, D), dtype=np.float32)
    pe[:, 0::2] = np.sin(angle[:, 0::2])
    pe[:, 1::2] = np.cos(angle[:, 1::2])
    return jnp.asarray(pe)


# ------------------------------ wrappers ------------------------------------

_VMEM_LIMIT = 32 * 1024 * 1024  # safe on v5e (128 MiB phys) / v6e / v7x (64 MiB phys)


def add_positional_encoding(emb, pe):
    """emb: (B, T, D); pe: (T, D) -> (B, T, D). Tiled over (B, T)."""
    B, T, D = emb.shape
    tt = _pick_tile(T, (256, 128, 64, 32, 16, 8))
    return pl.pallas_call(
        add_pe_kernel,
        out_shape=jax.ShapeDtypeStruct((B, T, D), emb.dtype),
        grid_spec=pltpu.PrefetchScalarGridSpec(
            num_scalar_prefetch=0,
            grid=(B, T // tt),
            in_specs=[
                pl.BlockSpec((1, tt, D), lambda b, t: (b, t, 0)),
                pl.BlockSpec((tt, D), lambda b, t: (t, 0)),
            ],
            out_specs=pl.BlockSpec((1, tt, D), lambda b, t: (b, t, 0)),
        ),
        compiler_params=pltpu.CompilerParams(
            dimension_semantics=("parallel", "parallel"),
            vmem_limit_bytes=_VMEM_LIMIT,
        ),
    )(emb, pe)


def embed_pe_linear(emb, pe, w):
    """emb: (B, T, D) f32; pe: (T, D) f32; w: (V, D) compute dtype.

    Returns logits (B, T, V) in f32.  Grid = (B, T-tiles, V-tiles); the (emb+pe)
    add is cached in VMEM scratch across the vocab axis."""
    B, T, D = emb.shape
    V = w.shape[0]

    tt = _pick_tile(T, (256, 128, 64, 32, 16, 8))

    V_pad = _round_up(V, 128)
    if V_pad != V:
        w = jnp.pad(w, ((0, V_pad - V), (0, 0)))
    tv = _pick_tile(V_pad, (1024, 512, 256, 128))

    grid = (B, T // tt, V_pad // tv)
    logits = pl.pallas_call(
        fused_embed_linear_kernel,
        out_shape=jax.ShapeDtypeStruct((B, T, V_pad), jnp.float32),
        grid_spec=pltpu.PrefetchScalarGridSpec(
            num_scalar_prefetch=0,
            grid=grid,
            in_specs=[
                pl.BlockSpec((1, tt, D), lambda b, t, j: (b, t, 0)),
                pl.BlockSpec((tt, D), lambda b, t, j: (t, 0)),
                pl.BlockSpec((tv, D), lambda b, t, j: (j, 0)),
            ],
            out_specs=pl.BlockSpec((1, tt, tv), lambda b, t, j: (b, t, j)),
            scratch_shapes=[pltpu.VMEM((tt, D), jnp.float32)],
        ),
        compiler_params=pltpu.CompilerParams(
            # B/T tiles shard across TensorCores (v7x megacore); the vocab axis
            # stays "arbitrary" so j==0 always initializes the cached h scratch.
            dimension_semantics=("parallel", "parallel", "arbitrary"),
            vmem_limit_bytes=_VMEM_LIMIT,
        ),
    )(emb, pe, w)

    if V_pad != V:
        logits = logits[..., :V]
    return logits


# --------------------------- params / forward -------------------------------

def init_params(emb_src, emb_trg, w_out, compute_dtype=jnp.bfloat16):
    """One-time param prep: keep nn.Linear weight in its (V, D) layout and
    pre-cast it to the MXU compute dtype (no per-call transpose / cast)."""
    return {
        "emb_src": emb_src,                      # (vocab_src, D) f32
        "emb_trg": emb_trg,                      # (vocab_trg, D) f32
        "w_out": w_out.astype(compute_dtype),    # (vocab_trg, D) bf16
    }


def transformer_forward(src, trg, params):
    """Mirrors TransformerModel.forward(src, trg)."""
    B, T = trg.shape
    D = params["emb_trg"].shape[1]

    pe = sinusoidal_pe(T, D)                     # (T, D) -- never tiled to (B*T, D)

    # Embedding gathers stay in XLA (glue; not the hot path at real sizes).
    # TODO(synk): gather could be fused via scalar-prefetched token ids +
    # pl.Element row-gather BlockSpec; left in XLA for now.
    emb_src = params["emb_src"][src]             # (B, T, D)
    emb_trg = params["emb_trg"][trg]             # (B, T, D)

    # embedded_src = src_embedding(src)  (consumed by the undefined decoder stack)
    embedded_src = add_positional_encoding(emb_src, pe)

    # TODO(synk): encoder/decoder stacks define no forward() in the reference
    # module (would raise NotImplementedError); treated as identity here.

    # logits = Linear(d_model, vocab_trg, bias=False)(trg_embedding(trg))
    logits = embed_pe_linear(emb_trg, pe, params["w_out"])
    return embedded_src, logits


# --------------------------------- main --------------------------------------

if __name__ == "__main__":
    # small shapes consistent with the module (d_model shrunk from 512 -> 32)
    B, T = 2, 8
    d_model = 32
    vocab_src, vocab_trg = 96, 128

    key = jax.random.PRNGKey(0)
    k1, k2, k3, k4, k5 = jax.random.split(key, 5)

    emb_src_w = jax.random.normal(k1, (vocab_src, d_model), jnp.float32)
    emb_trg_w = jax.random.normal(k2, (vocab_trg, d_model), jnp.float32)
    # nn.Linear(d_model, vocab_trg, bias=False): weight shape (vocab_trg, d_model)
    w_out = jax.random.normal(k3, (vocab_trg, d_model), jnp.float32) / math.sqrt(d_model)

    params = init_params(emb_src_w, emb_trg_w, w_out, compute_dtype=jnp.bfloat16)

    src = jax.random.randint(k4, (B, T), 0, vocab_src, dtype=jnp.int32)
    trg = jax.random.randint(k5, (B, T), 0, vocab_trg, dtype=jnp.int32)

    fwd = jax.jit(transformer_forward)
    embedded_src, logits = fwd(src, trg, params)
    jax.block_until_ready((embedded_src, logits))

    # --- reference check in plain JAX (same bf16 casts as the kernel) ---
    pe = sinusoidal_pe(T, d_model)
    ref_emb_src = params["emb_src"][src] + pe[None]                       # f32
    h_ref = (params["emb_trg"][trg] + pe[None]).astype(params["w_out"].dtype)
    ref_logits = lax.dot_general(
        h_ref, params["w_out"],
        dimension_numbers=(((2,), (1,)), ((), ())),
        preferred_element_type=jnp.float32,
    )

    np.testing.assert_allclose(np.asarray(embedded_src), np.asarray(ref_emb_src),
                               rtol=1e-5, atol=1e-5)
    np.testing.assert_allclose(np.asarray(logits), np.asarray(ref_logits),
                               rtol=1e-2, atol=1e-2)

    print("KERNEL_OK")
</pallas_src>

<mosaic_0001>
module attributes {stable_mosaic.version = 11 : i64} {
  func.func @fused_embed_linear_kernel(%arg0: i32, %arg1: i32, %arg2: i32, %arg3: memref<1x8x32xf32, #tpu.memory_space<vmem>>, %arg4: memref<8x32xf32, #tpu.memory_space<vmem>>, %arg5: memref<128x32xbf16, #tpu.memory_space<vmem>>, %arg6: memref<1x8x128xf32, #tpu.memory_space<vmem>>, %arg7: memref<8x32xf32, #tpu.memory_space<vmem>>) attributes {dimension_semantics = [#tpu.dimension_semantics<parallel>, #tpu.dimension_semantics<parallel>, #tpu.dimension_semantics<arbitrary>], iteration_bounds = array<i64: 2, 1, 1>, scalar_prefetch = 0 : i64, scratch_operands = 1 : i64, tpu.core_type = #tpu.core_type<tc>, window_params = [{transform_indices = @transform_0, window_bounds = array<i64: 1, 8, 32>}, {transform_indices = @transform_1, window_bounds = array<i64: 8, 32>}, {transform_indices = @transform_2, window_bounds = array<i64: 128, 32>}, {transform_indices = @transform_3, window_bounds = array<i64: 1, 8, 128>}]} {
    %c0_i32 = arith.constant 0 : i32
    %0 = arith.cmpi eq, %arg2, %c0_i32 : i32
    %1 = arith.extui %0 : i1 to i32
    %c0_i32_0 = arith.constant 0 : i32
    %2 = arith.cmpi ne, %1, %c0_i32_0 : i32
    scf.if %2 {
      %c0_7 = arith.constant 0 : index
      %c0_8 = arith.constant 0 : index
      %c0_9 = arith.constant 0 : index
      %10 = vector.load %arg3[%c0_7, %c0_8, %c0_9] : memref<1x8x32xf32, #tpu.memory_space<vmem>>, vector<1x8x32xf32>
      %11 = vector.shape_cast %10 : vector<1x8x32xf32> to vector<8x32xf32>
      %c0_10 = arith.constant 0 : index
      %c0_11 = arith.constant 0 : index
      %12 = vector.load %arg4[%c0_10, %c0_11] : memref<8x32xf32, #tpu.memory_space<vmem>>, vector<8x32xf32>
      %13 = arith.addf %11, %12 : vector<8x32xf32>
      %c0_12 = arith.constant 0 : index
      %c0_13 = arith.constant 0 : index
      %14 = vector.load %arg7[%c0_12, %c0_13] : memref<8x32xf32, #tpu.memory_space<vmem>>, vector<8x32xf32>
      tpu.vector_store %arg7[%c0_12, %c0_13], %13 {strides = array<i32>} : memref<8x32xf32, #tpu.memory_space<vmem>>, vector<8x32xf32>,
    } else {
    }
    %c0 = arith.constant 0 : index
    %c0_1 = arith.constant 0 : index
    %3 = vector.load %arg5[%c0, %c0_1] : memref<128x32xbf16, #tpu.memory_space<vmem>>, vector<128x32xbf16>
    %c0_2 = arith.constant 0 : index
    %c0_3 = arith.constant 0 : index
    %4 = vector.load %arg7[%c0_2, %c0_3] : memref<8x32xf32, #tpu.memory_space<vmem>>, vector<8x32xf32>
    %5 = arith.truncf %4 : vector<8x32xf32> to vector<8x32xbf16>
    %cst = arith.constant dense<0.000000e+00> : vector<8x128xf32>
    %6 = tpu.matmul %5, %3, %cst {dimension_numbers = #tpu.dot_dimension_numbers<[1], [1], [0], [0], [0, 0, 1, 0], [], []>} : vector<8x32xbf16>, vector<128x32xbf16>, vector<8x128xf32> -> vector<8x128xf32>
    %c0_4 = arith.constant 0 : index
    %c0_5 = arith.constant 0 : index
    %c0_6 = arith.constant 0 : index
    %7 = vector.load %arg6[%c0_4, %c0_5, %c0_6] : memref<1x8x128xf32, #tpu.memory_space<vmem>>, vector<1x8x128xf32>
    %8 = vector.shape_cast %7 : vector<1x8x128xf32> to vector<8x128xf32>
    %9 = vector.shape_cast %6 : vector<8x128xf32> to vector<1x8x128xf32>
    tpu.vector_store %arg6[%c0_4, %c0_5, %c0_6], %9 {strides = array<i32>} : memref<1x8x128xf32, #tpu.memory_space<vmem>>, vector<1x8x128xf32>,
    return
  }
  func.func @transform_0(%arg0: i32, %arg1: i32, %arg2: i32) -> (i32, i32, i32) {
    %c0_i32 = arith.constant 0 : i32
    %c0_i32_0 = arith.constant 0 : i32
    return %arg0, %arg1, %c0_i32 : i32, i32, i32
  }
  func.func @transform_1(%arg0: i32, %arg1: i32, %arg2: i32) -> (i32, i32) {
    %c0_i32 = arith.constant 0 : i32
    %c0_i32_0 = arith.constant 0 : i32
    return %arg1, %c0_i32 : i32, i32
  }
  func.func @transform_2(%arg0: i32, %arg1: i32, %arg2: i32) -> (i32, i32) {
    %c0_i32 = arith.constant 0 : i32
    %c0_i32_0 = arith.constant 0 : i32
    return %arg2, %c0_i32 : i32, i32
  }
  func.func @transform_3(%arg0: i32, %arg1: i32, %arg2: i32) -> (i32, i32, i32) {
    %c0_i32 = arith.constant 0 : i32
    return %arg0, %arg1, %arg2 : i32, i32, i32
  }
}

module attributes {stable_mosaic.version = 11 : i64} {
  func.func @add_pe_kernel(%arg0: i32, %arg1: i32, %arg2: memref<1x8x32xf32, #tpu.memory_space<vmem>>, %arg3: memref<8x32xf32, #tpu.memory_space<vmem>>, %arg4: memref<1x8x32xf32, #tpu.memory_space<vmem>>) attributes {dimension_semantics = [#tpu.dimension_semantics<parallel>, #tpu.dimension_semantics<parallel>], iteration_bounds = array<i64: 2, 1>, scalar_prefetch = 0 : i64, scratch_operands = 0 : i64, tpu.core_type = #tpu.core_type<tc>, window_params = [{transform_indices = @transform_0, window_bounds = array<i64: 1, 8, 32>}, {transform_indices = @transform_1, window_bounds = array<i64: 8, 32>}, {transform_indices = @transform_2, window_bounds = array<i64: 1, 8, 32>}]} {
    %c0 = arith.constant 0 : index
    %c0_0 = arith.constant 0 : index
    %c0_1 = arith.constant 0 : index
    %0 = vector.load %arg2[%c0, %c0_0, %c0_1] : memref<1x8x32xf32, #tpu.memory_space<vmem>>, vector<1x8x32xf32>
    %1 = vector.shape_cast %0 : vector<1x8x32xf32> to vector<8x32xf32>
    %c0_2 = arith.constant 0 : index
    %c0_3 = arith.constant 0 : index
    %2 = vector.load %arg3[%c0_2, %c0_3] : memref<8x32xf32, #tpu.memory_space<vmem>>, vector<8x32xf32>
    %3 = arith.addf %1, %2 : vector<8x32xf32>
    %c0_4 = arith.constant 0 : index
    %c0_5 = arith.constant 0 : index
    %c0_6 = arith.constant 0 : index
    %4 = vector.load %arg4[%c0_4, %c0_5, %c0_6] : memref<1x8x32xf32, #tpu.memory_space<vmem>>, vector<1x8x32xf32>
    %5 = vector.shape_cast %4 : vector<1x8x32xf32> to vector<8x32xf32>
    %6 = vector.shape_cast %3 : vector<8x32xf32> to vector<1x8x32xf32>
    tpu.vector_store %arg4[%c0_4, %c0_5, %c0_6], %6 {strides = array<i32>} : memref<1x8x32xf32, #tpu.memory_space<vmem>>, vector<1x8x32xf32>,
    return
  }
  func.func @transform_0(%arg0: i32, %arg1: i32) -> (i32, i32, i32) {
    %c0_i32 = arith.constant 0 : i32
    %c0_i32_0 = arith.constant 0 : i32
    return %arg0, %arg1, %c0_i32 : i32, i32, i32
  }
  func.func @transform_1(%arg0: i32, %arg1: i32) -> (i32, i32) {
    %c0_i32 = arith.constant 0 : i32
    %c0_i32_0 = arith.constant 0 : i32
    return %arg1, %c0_i32 : i32, i32
  }
  func.func @transform_2(%arg0: i32, %arg1: i32) -> (i32, i32, i32) {
    %c0_i32 = arith.constant 0 : i32
    %c0_i32_0 = arith.constant 0 : i32
    return %arg0, %arg1, %c0_i32 : i32, i32, i32
  }
}

</mosaic_0001>

<bundles_post_ra>
// kernel: transformer_forward.2
= control target key start
LH: loop header
LB: loop body
LE: loop exit
PB: predicated region body
PF: predicated region fallthrough
CT: control target
= control target key end

     0   :  { %7 = vsyncpa [#allocation3], 0  ;;  %s546_s0 = inlined_call_operand.vmem [shape: f32[2,8,32], index: 0, kind: input, shape index: {}]   ;;  %s547_s1 = inlined_call_operand.vmem [shape: f32[8,32], index: 1, kind: input, shape index: {}]   ;;  %s548_s2 = inlined_call_operand.hbm [shape: f32[2,8,32], index: 2, kind: output, shape index: {}]  }
   0x1   :  { %9 = vsyncpa [#allocation3 + $0x1], 0  ;;  %s451_s9 = smov 0   ;;  %s453_s10 = smov 0  }
   0x2   :  { %s455_s11 = smov 0   ;;  %s457_s12 = smov 0  }
   0x3   :  { %s459_s13 = smov 0   ;;  %s461_s14 = smov 0  }
   0x4 LB: > { %s289_s15 = sadd.s32 4294967295, %s434_s14   ;;  %s290_s16 = sadd.s32 4294967294, %s434_s14   ;;  %s434_s14 = sphi %s461_s14, %s15_s14   ;;  %s430_s13 = sphi %s459_s13, %s555_s13   ;;  %s426_s12 = sphi %s457_s12, %s554_s12   ;;  %s422_s11 = sphi %s455_s11, %s553_s11   ;;  %s418_s10 = sphi %s453_s10, %s552_s10   ;;  %s414_s9 = sphi %s451_s9, %s551_s9  }
   0x5   : > { %s27_s17 = sadd.s32 1, %s430_s13  ;;  %s90_s18 = sadd.s32 1, %s422_s11 }
   0x6   : > { %p29_p0 = scmp.ge.s32.totalorder %s27_s17, 2  ;;  %p100_p1 = scmp.ne.s32.totalorder %s422_s11, %s418_s10 }
   0x7   : > { %p101_p2 = scmp.eq.s32.totalorder %s289_s15, 1  ;;  %p106_p3 = scmp.ne.s32.totalorder %s418_s10, %s414_s9 }
   0x8   : > { %s557_s17 = smov (%p29_p0, %s27_s17), 0  ;;  %p107_p5 = scmp.eq.s32.totalorder %s290_s16, 1 }
   0x9   : > { %p489_p4 = por %p101_p2, %p100_p1  ;;  %s85_s20 = ssub.s32 %s430_s13, %s557_s17 }
   0xa   : > { %p294_p6 = scmp.ge.s32.totalorder %s434_s14, 1  ;;  %p88_p7 = scmp.eq.s32.totalorder %s85_s20, 0 }
   0xb   : > { %p496_p8 = por %p107_p5, %p106_p3  ;;  %p142_p9 = scmp.lt.s32.totalorder %s434_s14, 3 }
   0xc   : > { %s502_s22 = scalar_select %p88_p7, %s422_s11, %s90_s18  }
   0xd   : > { %p143_p10 = pnand %p294_p6, %p142_p9 }
   0xe   : > { %s167_s23 = sand.u32 (!%p143_p10), 1, %s418_s10   ;;  %p170_p11 = scmp.lt.s32.totalorder (!%p143_p10), %s426_s12, 1 }
   0xf   : > { %146 = sbr.rel (%p143_p10) target bundleno = 33 (0x21), region = 28  ;;  %s295_s24 = sshll.u32 (!%p143_p10), %s167_s23, 3 }
  0x10   : > { %s298_s25 = sshll.u32 (!%p143_p10), %s426_s12, 3  ;;  %s169_s4 = scalar_lea.vmem (!%p143_p10), [#allocation2], %s295_s24 }
  0x11   : > { %s198_s28 = scalar_lea.hbm (!%p143_p10), %s548_s2, %s298_s25  ;;  %s200_s5 = sshll.u32 (!%p143_p10), %s169_s4, 4  ;;  %s201_s5 = int_to_ptr.vmem [resolvable:$true] %s200_s5 }
  0x12   : > { %s202_s15 = sshll.u32 (!%p143_p10), %s198_s28, 4  ;;  %s187_s16 = scalar_lea.sflag (!%p143_p10), [#allocation3], %s167_s23  ;;  %s203_s15 = int_to_ptr.hbm [resolvable:$true] %s202_s15 }
  0x13   : > { %s376_s25 = scalar_lea.hbm (!%p143_p10), %s548_s2, 16 }
  0x14   : > { %s559_s12 = smov (!%p170_p11, %s426_s12), 1  ;;  %v182_v0 = vld [vmem:[%s547_s1] sm:$0xff]  ;;  %vm184_vm0 = vcmask 261120  }
  0x15   : > { %s296_s29 = sshll.u32 %s559_s12, 3  ;;  %s370_s12 = sshra.s32 %s203_s15, 4  ;;  %s371_s12 = int_to_ptr.hbm [resolvable:$true] %s370_s12 }
  0x16   : > { %s176_s8 = scalar_lea.vmem %s546_s0, %s296_s29  ;;  %s372_s18 = scalar_lea.hbm %s371_s12, 8 }
  0x17   : > { %v181_v1 = vld [vmem:[%s176_s8] sm:$0xff]  ;;  %p373_p12 = scmp.ne.s32.totalorder %s371_s12, %s372_s18  ;;  %p377_p1 = scmp.lt.s32.totalorder %s371_s12, %s548_s2 }
  0x18   : > { %v183_v2 = vadd.f32 %v182_v0, %v181_v1  ;;  %p378_p2 = scmp.lt.s32.totalorder %s376_s25, %s372_s18 }
  0x19   : > { %p374_p13 = pnand %p373_p12, %p489_p4 }
  0x1a   : > { %185 = vst.msk [vmem:[%s169_s4] sm:$0xff] %vm184_vm0, %v183_v2  ;;  %p379_p3 = por %p378_p2, %p377_p1 }
  0x1b   : > { %p375_p0 = pneg %p374_p13 }
  0x1d   : > { %p380_p5 = pnand %p379_p3, %p375_p0 }
  0x1f   : > { %383 = shalt.err (!%p380_p5)
}
  0x20   : > { %301 = dma.vmem_to_hbm [thread:$0]  (%p489_p4), %s201_s5, 128, %s203_s15, %s187_s16  }
  0x21 PF: > { %p307_p6 = scmp.ge.s32.totalorder %s434_s14, 2  ;;  %s214_s23 = sand.u32 1, %s414_s9  }
  0x22   : > { %s215_s28 = scalar_lea.sflag [#allocation3], %s214_s23 }
  0x23   : > { %p304_p7 = pnand %p307_p6, %p496_p8 }
  0x25   : > { %p305_p9 = pneg %p304_p7 }
  0x27   : > { %409 = dma.done.wait (%p305_p9), %s215_s28, 128  }
  0x28   : > { %411 = vsyncadd (%p305_p9), %s215_s28, 4294967168  ;;  %s15_s14 = sadd.s32 1, %s434_s14   ;;  %s551_s9 = smov %s418_s10 }
  0x29   : > { %p12_p10 = scmp.ge.s32.totalorder %s15_s14, 4   ;;  %s552_s10 = smov %s422_s11 }
  0x2a   : > { %s553_s11 = smov %s502_s22  ;;  %s554_s12 = smov %s430_s13 }
  0x2b   : > { %s555_s13 = smov %s557_s17  ;;  %14 = sbr.rel (!%p12_p10) target bundleno = 4 (0x4), region = 66 }
  0x30   :  { %221 = vsyncpa [#allocation3], 1 }
  0x31   :  { %223 = vsyncpa [#allocation3 + $0x1], 1 }

// kernel: transformer_forward.3
= control target key start
LH: loop header
LB: loop body
LE: loop exit
PB: predicated region body
PF: predicated region fallthrough
CT: control target
= control target key end

     0   :  { %8 = vsyncpa [#allocation4], 0  ;;  %s814_s0 = inlined_call_operand.vmem [shape: f32[2,8,32], index: 0, kind: input, shape index: {}]   ;;  %s815_s1 = inlined_call_operand.vmem [shape: f32[8,32], index: 1, kind: input, shape index: {}]   ;;  %s816_s2 = inlined_call_operand.vmem [shape: bf16[128,32], index: 2, kind: input, shape index: {}]   ;;  %s817_s3 = inlined_call_operand.hbm [shape: f32[2,8,128], index: 3, kind: output, shape index: {}]  }
   0x1   :  { %10 = vsyncpa [#allocation4 + $0x1], 0  ;;  %s680_s12 = smov 0   ;;  %s682_s13 = smov 0  }
   0x2   :  { %s684_s14 = smov 0   ;;  %s686_s15 = smov 0  }
   0x3   :  { %s688_s16 = smov 0   ;;  %s690_s17 = smov 0  }
   0x4 LB: > { %s471_s18 = sadd.s32 4294967295, %s658_s17   ;;  %s472_s19 = sadd.s32 4294967294, %s658_s17   ;;  %s658_s17 = sphi %s690_s17, %s16_s17   ;;  %s654_s16 = sphi %s688_s16, %s824_s16   ;;  %s650_s15 = sphi %s686_s15, %s823_s15   ;;  %s646_s14 = sphi %s684_s14, %s822_s14   ;;  %s642_s13 = sphi %s682_s13, %s821_s13   ;;  %s638_s12 = sphi %s680_s12, %s820_s12  }
   0x5   : > { %s35_s20 = sadd.s32 1, %s654_s16  ;;  %s126_s21 = sadd.s32 1, %s646_s14 }
   0x6   : > { %p37_p0 = scmp.ge.s32.totalorder %s35_s20, 2  ;;  %p136_p1 = scmp.ne.s32.totalorder %s646_s14, %s642_s13 }
   0x7   : > { %p137_p2 = scmp.eq.s32.totalorder %s471_s18, 1  ;;  %p142_p3 = scmp.ne.s32.totalorder %s642_s13, %s638_s12 }
   0x8   : > { %s826_s20 = smov (%p37_p0, %s35_s20), 0  ;;  %p143_p5 = scmp.eq.s32.totalorder %s472_s19, 1 }
   0x9   : > { %p720_p4 = por %p137_p2, %p136_p1  ;;  %s119_s23 = ssub.s32 %s654_s16, %s826_s20 }
   0xa   : > { %p477_p6 = scmp.ge.s32.totalorder %s658_s17, 1  ;;  %p124_p7 = scmp.eq.s32.totalorder %s119_s23, 0 }
   0xb   : > { %p727_p8 = por %p143_p5, %p142_p3  ;;  %p187_p9 = scmp.lt.s32.totalorder %s658_s17, 3 }
   0xc   : > { %s733_s25 = scalar_select %p124_p7, %s646_s14, %s126_s21  }
   0xd   : > { %p188_p10 = pnand %p477_p6, %p187_p9 }
   0xe   : > { %p222_p11 = scmp.lt.s32.totalorder (!%p188_p10), %s650_s15, 1  ;;  %s219_s5 = sand.u32 (!%p188_p10), 1, %s642_s13  }
   0xf   : > { %191 = sbr.rel (%p188_p10) target bundleno = 219 (0xdb), region = 32  ;;  %s478_s7 = sshll.u32 (!%p188_p10), %s219_s5, 3 }
  0x10   : > { %s221_s11 = scalar_lea.vmem (!%p188_p10), [#allocation3], %s478_s7  ;;  %s349_s21 = scalar_lea.sflag (!%p188_p10), [#allocation4], %s219_s5 }
  0x11   : > { %s363_s18 = sshll.u32 (!%p188_p10), %s221_s11, 4  ;;  %s600_s28 = scalar_lea.hbm (!%p188_p10), %s817_s3, 16  ;;  %s364_s18 = int_to_ptr.vmem [resolvable:$true] %s363_s18 }
  0x14   : > { %vm246_vm0 = vcmask 261120   ;;  %v524_v0 = vld [vmem:[%s816_s2 + $0x38] sm:$0xff]  ;;  %v523_v2 = vld [vmem:[%s816_s2 + $0x30] sm:$0xff]  ;;  %s223_s30 = scalar_select %p222_p11, %s650_s15, 1  ;;  %v522_v4 = vld [vmem:[%s816_s2 + $0x28] sm:$0xff] }
  0x15   : > { %v332_v1 = vsel %vm246_vm0, %v524_v0, 0  ;;  %v329_v3 = vsel %vm246_vm0, %v523_v2, 0  ;;  %v326_v5 = vsel %vm246_vm0, %v522_v4, 0  ;;  %v521_v6 = vld [vmem:[%s816_s2 + $0x20] sm:$0xff]  ;;  %v520_v11 = vld [vmem:[%s816_s2 + $0x18] sm:$0xff]  ;;  %v519_v13 = vld [vmem:[%s816_s2 + $0x10] sm:$0xff] }
  0x16   : > { %334 = vmatpush.bf16.xpose.msra.mxu0 %v332_v1  ;;  %s479_s6 = sshll.u32 %s223_s30, 3  ;;  %v244_v8 = vld [vmem:[%s815_s1] sm:$0xff]  ;;  %v323_v10 = vsel %vm246_vm0, %v521_v6, 0  ;;  %v320_v12 = vsel %vm246_vm0, %v520_v11, 0  ;;  %v317_v14 = vsel %vm246_vm0, %v519_v13, 0  ;;  %v518_v15 = vld [vmem:[%s816_s2 + $0x8] sm:$0xff] }
  0x17   : > { %s228_s9 = scalar_lea.vmem %s814_s0, %s479_s6  ;;  %v314_v16 = vsel %vm246_vm0, %v518_v15, 0  ;;  %v517_v17 = vld [vmem:[%s816_s2] sm:$0xff]  ;;  %s514_s6 = sshll.u32 %s650_s15, 3 }
  0x18   : > { %v243_v7 = vld [vmem:[%s228_s9] sm:$0xff]  ;;  %v311_v18 = vsel %vm246_vm0, %v517_v17, 0  ;;  %s361_s10 = scalar_lea.hbm %s817_s3, %s514_s6 }
  0x19   : > { %v245_v9 = vadd.f32 %v244_v8, %v243_v7  ;;  %s365_s19 = sshll.u32 %s361_s10, 4  ;;  %s366_s19 = int_to_ptr.hbm [resolvable:$true] %s365_s19 }
  0x1a   : > { %s594_s23 = sshra.s32 %s366_s19, 4  ;;  %s595_s23 = int_to_ptr.hbm [resolvable:$true] %s594_s23 }
  0x1b   : > { %247 = vst.msk [vmem:[#allocation2] sm:$0xff] %vm246_vm0, %v245_v9  ;;  %s596_s26 = scalar_lea.hbm %s595_s23, 8  ;;  %p601_p1 = scmp.lt.s32.totalorder %s595_s23, %s817_s3 }
  0x1c   : > { %p597_p12 = scmp.ne.s32.totalorder %s595_s23, %s596_s26  ;;  %p602_p2 = scmp.lt.s32.totalorder %s600_s28, %s596_s26 }
  0x1e   : > { %335 = vmatpush.bf16.xpose.msra.mxu0 %v329_v3  ;;  %p598_p13 = pnand %p597_p12, %p720_p4  ;;  %p603_p3 = por %p602_p2, %p601_p1 }
  0x20   : > { %p599_p0 = pneg %p598_p13 }
  0x22   : > { %v264_v19 = vld [vmem:[#allocation2] sm:$0xff]  ;;  %p604_p5 = pnand %p603_p3, %p599_p0 }
  0x23   : > { %v265_v20 = vpack.c.bf16 %v264_v19, %v264_v19 }
  0x26   : > { %336 = vmatpush.bf16.xpose.msra.mxu0 %v326_v5 }
  0x2e   : > { %337 = vmatpush.bf16.xpose.msra.mxu0 %v323_v10 }
  0x36   : > { %338 = vmatpush.bf16.xpose.msra.mxu0 %v320_v12 }
  0x3e   : > { %339 = vmatpush.bf16.xpose.msra.mxu0 %v317_v14 }
  0x46   : > { %340 = vmatpush.bf16.xpose.msra.mxu0 %v314_v16 }
  0x4e   : > { %341 = vmatpush.bf16.xpose.msra.mxu0 %v311_v18 }
  0x55   : > { %512 = vmatmul.msk.bf16.vlgmr.msra.gmra.mxu0 %vm246_vm0, %v265_v20 }
  0xd2   : > { %v343_v21 = vpop.f32.mrf.mxu0 }
  0xd3   : > { %347 = vst [vmem:[%s221_s11] sm:$0xff] %v343_v21 }
  0xd4   : > { %607 = shalt.err (!%p604_p5)
}
  0xd5   : > { %525 = dma.vmem_to_hbm [thread:$0]  (%p720_p4), %s364_s18, 128, %s366_s19, %s349_s21  }
  0xda   : > { %v345_v22 = vpop.f32.mrf.mxu0 }
  0xdb PF: > { %p531_p6 = scmp.ge.s32.totalorder %s658_s17, 2  ;;  %s377_s4 = sand.u32 1, %s638_s12  }
  0xdc   : > { %s378_s5 = scalar_lea.sflag [#allocation4], %s377_s4 }
  0xdd   : > { %p528_p7 = pnand %p531_p6, %p727_p8 }
  0xdf   : > { %p529_p9 = pneg %p528_p7 }
  0xe1   : > { %633 = dma.done.wait (%p529_p9), %s378_s5, 128  }
  0xe2   : > { %635 = vsyncadd (%p529_p9), %s378_s5, 4294967168  ;;  %s16_s17 = sadd.s32 1, %s658_s17   ;;  %s820_s12 = smov %s642_s13 }
  0xe3   : > { %p13_p10 = scmp.ge.s32.totalorder %s16_s17, 4   ;;  %s821_s13 = smov %s646_s14 }
  0xe4   : > { %s822_s14 = smov %s733_s25  ;;  %s823_s15 = smov %s654_s16 }
  0xe5   : > { %s824_s16 = smov %s826_s20  ;;  %15 = sbr.rel (!%p13_p10) target bundleno = 4 (0x4), region = 77 }
  0xea   :  { %384 = vsyncpa [#allocation4], 1 }
  0xeb   :  { %386 = vsyncpa [#allocation4 + $0x1], 1 }

</bundles_post_ra>
